<compile_context>
chip_gen: v7x
topology: tpu7x:2x2x1
jax: 0.10.0
libtpu: 0.0.40
codegen_flags: <defaults>
</compile_context>

<pallas_src>
import jax
import jax.numpy as jnp
from jax import lax
from jax.experimental import pallas as pl
from jax.experimental.pallas import tpu as pltpu


def _round_up(x, m):
    return ((x + m - 1) // m) * m


def _pick_q_tile(n):
    for t in (512, 256, 128, 64, 32, 16, 8):
        if n % t == 0:
            return t
    return n


def _make_stage1_kernel(tq, h_actual):
    scale = float(h_actual) ** 0.5

    def kernel(x_ref, wq_ref, bq_ref, wk_ref, bk_ref, wv_ref, bv_ref,
               scores_ref, v_ref):
        row0 = pl.multiple_of(pl.program_id(0) * tq, tq)
        md = wq_ref.dtype                       # MXU operand dtype (f32 or bf16)
        x_all = x_ref[...]
        x_q = x_ref[pl.ds(row0, tq), :]
        q = jnp.dot(x_q.astype(md), wq_ref[...],
                    preferred_element_type=jnp.float32) + bq_ref[...]
        # TODO(synk): at production shapes with tq < H, hoist the K projection out of the
        # query-tile loop (it is recomputed once per tile here).
        k = jnp.dot(x_all.astype(md), wk_ref[...],
                    preferred_element_type=jnp.float32) + bk_ref[...]
        v = jnp.dot(x_q.astype(md), wv_ref[...],
                    preferred_element_type=jnp.float32) + bv_ref[...]
        q = q / scale
        # q @ k^T without an explicit transpose (contract last dims on the MXU).
        scores = lax.dot_general(q.astype(md), k.astype(md),
                                 dimension_numbers=(((1,), (1,)), ((), ())),
                                 preferred_element_type=jnp.float32)
        scores_ref[...] = scores.astype(scores_ref.dtype)
        v_ref[...] = v.astype(v_ref.dtype)

    return kernel


def _make_stage2_kernel(tq, h_actual):
    inv_h = 1.0 / float(h_actual)

    def kernel(w_ref, a_ref, scores_ref, v_ref, x_ref, wo_ref, bo_ref,
               gamma_ref, beta_ref, out_ref):
        row0 = pl.multiple_of(pl.program_id(1) * tq, tq)

        # Soft subcluster mask in multiplicative (exp) form.  Reference:
        #   M = (w*a_s)@(w*a_s)^T ; mask = log(M/(max(M)+1e-8) + 1e-10)
        # max(M) equals the largest diagonal of the Gram matrix (Cauchy–Schwarz), i.e. the
        # max squared row norm of w*a_s — an O(N*C) reduce, no cross-tile dependency.
        # (w/a kept row-major (N, C): the rhs-transposed dot_general below is the
        #  MXU-native contraction; the elementwise mul is O(N*C) and negligible.)
        wa = w_ref[...] * a_ref[...]                                       # (N, C)
        wa_q = w_ref[pl.ds(row0, tq), :] * a_ref[pl.ds(row0, tq), :]       # (tq, C)
        max_m = jnp.max(jnp.sum(wa * wa, axis=1, keepdims=True),
                        axis=0, keepdims=True)                             # (1, 1)
        m = lax.dot_general(wa_q, wa,
                            dimension_numbers=(((1,), (1,)), ((), ())),
                            preferred_element_type=jnp.float32)            # (tq, N)
        exp_mask = m * pl.reciprocal(max_m + 1e-8) + 1e-10
        # Per-row normalization cancels in the softmax but prevents a uniformly tiny mask
        # row from underflowing the whole probability row.
        exp_mask = exp_mask * pl.reciprocal(
            jnp.max(exp_mask, axis=-1, keepdims=True))

        # Masked softmax over keys, mask folded in multiplicatively:
        #   exp(s + log m) == exp(s) * m  -> no N*N log needed.
        s = scores_ref[...].astype(jnp.float32)
        s_max = jnp.max(s, axis=-1, keepdims=True)
        p = jnp.exp(s - s_max) * exp_mask
        denom = jnp.maximum(jnp.sum(p, axis=-1, keepdims=True), 1e-30)
        attn = p * pl.reciprocal(denom)
        # TODO(synk): attn_dropout / out_dropout are identity here (eval mode).

        md = wo_ref.dtype
        ctx = jnp.dot(attn.astype(v_ref.dtype), v_ref[...],
                      preferred_element_type=jnp.float32)                  # (tq, Hp)
        out = jnp.dot(ctx.astype(md), wo_ref[...],
                      preferred_element_type=jnp.float32)
        out = out + bo_ref[...] + x_ref[...]                               # residual

        # LayerNorm over the true H (padded lanes of `out` are exact zeros, so the sums
        # over Hp equal the sums over H); biased variance, eps=1e-12 (torch semantics).
        mu = jnp.sum(out, axis=-1, keepdims=True) * inv_h
        ms = jnp.sum(out * out, axis=-1, keepdims=True) * inv_h
        var = ms - mu * mu
        normed = (out - mu) * lax.rsqrt(var + 1e-12)
        out_ref[...] = (normed * gamma_ref[...] + beta_ref[...]).astype(out_ref.dtype)

    return kernel


def _forward(stock_embs, soft_cluster_weights, latent_subsegment_assignments,
             current_n_clusters, params, n_subclusters, mxu_dtype,
             single_buffer_shared):
    N, H = stock_embs.shape
    C = int(current_n_clusters)
    K = int(n_subclusters)
    Hp = _round_up(max(H, 128), 128)          # lane-dense last dim
    tq = _pick_q_tile(N)
    n_qt = N // tq
    mxu_dtype = jnp.dtype(mxu_dtype)
    inter_dtype = jnp.float32 if mxu_dtype == jnp.float32 else mxu_dtype
    pad_h = Hp - H

    def pad_last(v):
        if pad_h == 0:
            return v
        return jnp.pad(v, [(0, 0)] * (v.ndim - 1) + [(0, pad_h)])

    def pad_weight(wmat):
        wt = wmat.T.astype(jnp.float32)       # nn.Linear weight is (out, in): y = x @ W^T
        if pad_h:
            wt = jnp.pad(wt, ((0, pad_h), (0, pad_h)))
        return wt.astype(mxu_dtype)

    x = pad_last(stock_embs.astype(jnp.float32))                              # (N, Hp)
    w = soft_cluster_weights[:, :C].astype(jnp.float32)                       # (N, C)
    a = jnp.transpose(latent_subsegment_assignments[:, :C, :],
                      (2, 0, 1)).astype(jnp.float32)                          # (K, N, C)

    wq_t = pad_weight(params["wq"]); wk_t = pad_weight(params["wk"])
    wv_t = pad_weight(params["wv"]); wo_t = pad_weight(params["wo"])
    bq = pad_last(params["bq"].reshape(1, H).astype(jnp.float32))
    bk = pad_last(params["bk"].reshape(1, H).astype(jnp.float32))
    bv = pad_last(params["bv"].reshape(1, H).astype(jnp.float32))
    bo = pad_last(params["bo"].reshape(1, H).astype(jnp.float32))
    gamma = pad_last(params["gamma"].reshape(K, 1, H).astype(jnp.float32))
    beta = pad_last(params["beta"].reshape(K, 1, H).astype(jnp.float32))

    def spec(shape, index_map, *, invariant=False):
        # Grid-invariant blocks only need a single buffer; freed VMEM buys larger tiles.
        if invariant and single_buffer_shared:
            return pl.BlockSpec(shape, index_map, pipeline_mode=pl.Buffered(1))
        return pl.BlockSpec(shape, index_map)

    f32sz = 4
    wsz = mxu_dtype.itemsize
    isz = jnp.dtype(inter_dtype).itemsize
    fb = 1 if single_buffer_shared else 2

    # --- Stage 1: Q/K/V projections + raw scores, tiled over query rows. ---
    est1 = (fb * (N * Hp * f32sz + 4 * Hp * Hp * wsz + 4 * Hp * f32sz)
            + 2 * (tq * N * isz + tq * Hp * isz)
            + 4 * (tq * Hp + N * Hp + tq * N) * f32sz)          # temporaries headroom
    vmem1 = int(min(48 << 20, max(32 << 20, 2 * est1)))

    scores, v = pl.pallas_call(
        _make_stage1_kernel(tq, H),
        out_shape=(jax.ShapeDtypeStruct((N, N), inter_dtype),
                   jax.ShapeDtypeStruct((N, Hp), inter_dtype)),
        grid_spec=pltpu.PrefetchScalarGridSpec(
            num_scalar_prefetch=0,
            grid=(n_qt,),
            in_specs=[
                spec((N, Hp), lambda i: (0, 0), invariant=True),    # x (q rows sliced in-kernel)
                spec((Hp, Hp), lambda i: (0, 0), invariant=True),   # wq^T
                spec((1, Hp), lambda i: (0, 0), invariant=True),    # bq
                spec((Hp, Hp), lambda i: (0, 0), invariant=True),   # wk^T
                spec((1, Hp), lambda i: (0, 0), invariant=True),    # bk
                spec((Hp, Hp), lambda i: (0, 0), invariant=True),   # wv^T
                spec((1, Hp), lambda i: (0, 0), invariant=True),    # bv
            ],
            out_specs=[
                pl.BlockSpec((tq, N), lambda i: (i, 0)),            # scores row-tile
                pl.BlockSpec((tq, Hp), lambda i: (i, 0)),           # v row-tile
            ],
        ),
        compiler_params=pltpu.CompilerParams(
            dimension_semantics=("parallel",),
            vmem_limit_bytes=vmem1),
    )(x, wq_t, bq, wk_t, bk, wv_t, bv)

    # --- Stage 2: per-(subcluster, query-tile) mask / softmax / context / o_proj / LN. ---
    est2 = (fb * (N * C * f32sz + N * Hp * isz + Hp * Hp * wsz + Hp * f32sz)   # w, v, wo, bo
            + 2 * (N * C * f32sz + 2 * Hp * f32sz)                             # a, gamma, beta
            + 2 * (tq * N * isz + 2 * tq * Hp * f32sz)                         # scores, x, out
            + (4 * tq * N + 3 * tq * Hp) * f32sz)                              # temporaries
    vmem2 = int(min(48 << 20, max(32 << 20, 2 * est2)))

    out = pl.pallas_call(
        _make_stage2_kernel(tq, H),
        out_shape=jax.ShapeDtypeStruct((K, N, Hp), jnp.float32),
        grid_spec=pltpu.PrefetchScalarGridSpec(
            num_scalar_prefetch=0,
            grid=(K, n_qt),
            in_specs=[
                spec((N, C), lambda s, i: (0, 0), invariant=True),        # w (shared)
                pl.BlockSpec((None, N, C), lambda s, i: (s, 0, 0)),       # a_s
                pl.BlockSpec((tq, N), lambda s, i: (i, 0)),               # scores tile
                spec((N, Hp), lambda s, i: (0, 0), invariant=True),       # v (full, shared)
                pl.BlockSpec((tq, Hp), lambda s, i: (i, 0)),              # residual x tile
                spec((Hp, Hp), lambda s, i: (0, 0), invariant=True),      # wo^T (shared)
                spec((1, Hp), lambda s, i: (0, 0), invariant=True),       # bo (shared)
                pl.BlockSpec((None, 1, Hp), lambda s, i: (s, 0, 0)),      # gamma_s
                pl.BlockSpec((None, 1, Hp), lambda s, i: (s, 0, 0)),      # beta_s
            ],
            out_specs=pl.BlockSpec((None, tq, Hp), lambda s, i: (s, i, 0)),
        ),
        compiler_params=pltpu.CompilerParams(
            dimension_semantics=("parallel", "parallel"),
            vmem_limit_bytes=vmem2),
    )(w, a, scores, v, x, wo_t, bo, gamma, beta)

    return out[:, :, :H]


def intra_stock_correlation(stock_embs, soft_cluster_weights,
                            latent_subsegment_assignments, current_n_clusters,
                            params, n_subclusters, mxu_dtype=jnp.float32):
    """Forward pass.  Returns the stacked (K, N, H) outputs — identical to torch.stack of
    the PyTorch module's per-subcluster output list; index [s] to recover the list form."""
    args = (stock_embs, soft_cluster_weights, latent_subsegment_assignments,
            current_n_clusters, params, n_subclusters, mxu_dtype)
    try:
        return _forward(*args, single_buffer_shared=True)
    except Exception:
        # pl.Buffered(1) single-buffering of grid-invariant inputs is not supported by
        # this JAX build: fall back to default double-buffering (semantics unchanged).
        return _forward(*args, single_buffer_shared=False)


def _reference_forward(x, w_full, a_full, C, params, K):
    """Pure-JAX reference matching the PyTorch forward semantics."""
    H = x.shape[1]
    w = w_full[:, :C]
    a = a_full[:, :C, :]
    q = x @ params["wq"].T + params["bq"]
    k = x @ params["wk"].T + params["bk"]
    v = x @ params["wv"].T + params["bv"]
    q = q / (H ** 0.5)
    scores = q @ k.T
    outs = []
    for s in range(K):
        wa = w * a[:, :, s]
        mask = wa @ wa.T
        mask = mask / (mask.max() + 1e-8)
        mask = jnp.log(mask + 1e-10)
        attn = jax.nn.softmax(scores + mask, axis=-1)
        ctx = attn @ v
        out = ctx @ params["wo"].T + params["bo"] + x
        mu = out.mean(-1, keepdims=True)
        var = ((out - mu) ** 2).mean(-1, keepdims=True)
        normed = (out - mu) / jnp.sqrt(var + 1e-12)
        outs.append(normed * params["gamma"][s] + params["beta"][s])
    return jnp.stack(outs)


if __name__ == "__main__":
    N, H, C_total, K = 8, 32, 4, 6
    current_n_clusters = 4

    key = jax.random.PRNGKey(0)
    ks = jax.random.split(key, 12)

    stock_embs = jax.random.normal(ks[0], (N, H), dtype=jnp.float32)
    soft_cluster_weights = jax.nn.softmax(
        jax.random.normal(ks[1], (N, C_total), dtype=jnp.float32), axis=-1)
    latent_subsegment_assignments = jax.nn.softmax(
        jax.random.normal(ks[2], (N, C_total, K), dtype=jnp.float32), axis=-1)

    params = {
        "wq": 0.05 * jax.random.normal(ks[3], (H, H), dtype=jnp.float32),
        "bq": 0.01 * jax.random.normal(ks[4], (H,), dtype=jnp.float32),
        "wk": 0.05 * jax.random.normal(ks[5], (H, H), dtype=jnp.float32),
        "bk": 0.01 * jax.random.normal(ks[6], (H,), dtype=jnp.float32),
        "wv": 0.05 * jax.random.normal(ks[7], (H, H), dtype=jnp.float32),
        "bv": 0.01 * jax.random.normal(ks[8], (H,), dtype=jnp.float32),
        "wo": 0.05 * jax.random.normal(ks[9], (H, H), dtype=jnp.float32),
        "bo": 0.01 * jax.random.normal(ks[10], (H,), dtype=jnp.float32),
        "gamma": jnp.ones((K, H), dtype=jnp.float32),
        "beta": jnp.zeros((K, H), dtype=jnp.float32),
    }

    refs = _reference_forward(stock_embs, soft_cluster_weights,
                              latent_subsegment_assignments,
                              current_n_clusters, params, K)

    # Default f32 MXU path: tight tolerance check.
    out_f32 = intra_stock_correlation(stock_embs, soft_cluster_weights,
                                      latent_subsegment_assignments,
                                      current_n_clusters, params, K,
                                      mxu_dtype=jnp.float32)
    out_f32 = jax.block_until_ready(out_f32)
    if not jnp.allclose(out_f32, refs, rtol=1e-4, atol=1e-5):
        raise AssertionError("Pallas kernel (f32 MXU) does not match JAX reference")

    # bf16-MXU path (perf-review suggestion, gated behind the flag): looser tolerance.
    out_bf16 = intra_stock_correlation(stock_embs, soft_cluster_weights,
                                       latent_subsegment_assignments,
                                       current_n_clusters, params, K,
                                       mxu_dtype=jnp.bfloat16)
    out_bf16 = jax.block_until_ready(out_bf16)
    if not jnp.allclose(out_bf16, refs, rtol=2e-2, atol=2e-2):
        raise AssertionError("Pallas kernel (bf16 MXU) does not match JAX reference")

    print("KERNEL_OK")
</pallas_src>

<mosaic_0001>
module attributes {stable_mosaic.version = 11 : i64} {
  func.func @kernel(%arg0: i32, %arg1: memref<8x128xf32, #tpu.memory_space<vmem>>, %arg2: memref<128x128xf32, #tpu.memory_space<vmem>>, %arg3: memref<1x128xf32, #tpu.memory_space<vmem>>, %arg4: memref<128x128xf32, #tpu.memory_space<vmem>>, %arg5: memref<1x128xf32, #tpu.memory_space<vmem>>, %arg6: memref<128x128xf32, #tpu.memory_space<vmem>>, %arg7: memref<1x128xf32, #tpu.memory_space<vmem>>, %arg8: memref<8x8xf32, #tpu.memory_space<vmem>>, %arg9: memref<8x128xf32, #tpu.memory_space<vmem>>) attributes {dimension_semantics = [#tpu.dimension_semantics<parallel>], iteration_bounds = array<i64: 1>, scalar_prefetch = 0 : i64, scratch_operands = 0 : i64, tpu.core_type = #tpu.core_type<tc>, window_params = [{pipeline_mode = #tpu.pipeline_mode<synchronous>, transform_indices = @transform_0, window_bounds = array<i64: 8, 128>}, {pipeline_mode = #tpu.pipeline_mode<synchronous>, transform_indices = @transform_1, window_bounds = array<i64: 128, 128>}, {pipeline_mode = #tpu.pipeline_mode<synchronous>, transform_indices = @transform_2, window_bounds = array<i64: 1, 128>}, {pipeline_mode = #tpu.pipeline_mode<synchronous>, transform_indices = @transform_3, window_bounds = array<i64: 128, 128>}, {pipeline_mode = #tpu.pipeline_mode<synchronous>, transform_indices = @transform_4, window_bounds = array<i64: 1, 128>}, {pipeline_mode = #tpu.pipeline_mode<synchronous>, transform_indices = @transform_5, window_bounds = array<i64: 128, 128>}, {pipeline_mode = #tpu.pipeline_mode<synchronous>, transform_indices = @transform_6, window_bounds = array<i64: 1, 128>}, {transform_indices = @transform_7, window_bounds = array<i64: 8, 8>}, {transform_indices = @transform_8, window_bounds = array<i64: 8, 128>}]} {
    %c8_i32 = arith.constant 8 : i32
    %0 = arith.muli %arg0, %c8_i32 : i32
    %1 = tpu.assume_multiple %0, 8 : i32
    %c0 = arith.constant 0 : index
    %c0_0 = arith.constant 0 : index
    %2 = vector.load %arg1[%c0, %c0_0] : memref<8x128xf32, #tpu.memory_space<vmem>>, vector<8x128xf32>
    %3 = arith.index_cast %1 : i32 to index
    %c0_1 = arith.constant 0 : index
    %4 = vector.load %arg1[%3, %c0_1] : memref<8x128xf32, #tpu.memory_space<vmem>>, vector<8x128xf32>
    %c0_2 = arith.constant 0 : index
    %c0_3 = arith.constant 0 : index
    %5 = vector.load %arg2[%c0_2, %c0_3] : memref<128x128xf32, #tpu.memory_space<vmem>>, vector<128x128xf32>
    %cst = arith.constant dense<0.000000e+00> : vector<8x128xf32>
    %6 = tpu.matmul %4, %5, %cst {dimension_numbers = #tpu.dot_dimension_numbers<[1], [0], [0], [1], [0, 0, 1, 1], [], []>} : vector<8x128xf32>, vector<128x128xf32>, vector<8x128xf32> -> vector<8x128xf32>
    %c0_4 = arith.constant 0 : index
    %c0_5 = arith.constant 0 : index
    %7 = vector.load %arg3[%c0_4, %c0_5] : memref<1x128xf32, #tpu.memory_space<vmem>>, vector<1x128xf32>
    %8 = vector.broadcast %7 : vector<1x128xf32> to vector<8x128xf32>
    %9 = arith.addf %6, %8 : vector<8x128xf32>
    %c0_6 = arith.constant 0 : index
    %c0_7 = arith.constant 0 : index
    %10 = vector.load %arg4[%c0_6, %c0_7] : memref<128x128xf32, #tpu.memory_space<vmem>>, vector<128x128xf32>
    %cst_8 = arith.constant dense<0.000000e+00> : vector<8x128xf32>
    %11 = tpu.matmul %2, %10, %cst_8 {dimension_numbers = #tpu.dot_dimension_numbers<[1], [0], [0], [1], [0, 0, 1, 1], [], []>} : vector<8x128xf32>, vector<128x128xf32>, vector<8x128xf32> -> vector<8x128xf32>
    %c0_9 = arith.constant 0 : index
    %c0_10 = arith.constant 0 : index
    %12 = vector.load %arg5[%c0_9, %c0_10] : memref<1x128xf32, #tpu.memory_space<vmem>>, vector<1x128xf32>
    %13 = vector.broadcast %12 : vector<1x128xf32> to vector<8x128xf32>
    %14 = arith.addf %11, %13 : vector<8x128xf32>
    %c0_11 = arith.constant 0 : index
    %c0_12 = arith.constant 0 : index
    %15 = vector.load %arg6[%c0_11, %c0_12] : memref<128x128xf32, #tpu.memory_space<vmem>>, vector<128x128xf32>
    %cst_13 = arith.constant dense<0.000000e+00> : vector<8x128xf32>
    %16 = tpu.matmul %4, %15, %cst_13 {dimension_numbers = #tpu.dot_dimension_numbers<[1], [0], [0], [1], [0, 0, 1, 1], [], []>} : vector<8x128xf32>, vector<128x128xf32>, vector<8x128xf32> -> vector<8x128xf32>
    %c0_14 = arith.constant 0 : index
    %c0_15 = arith.constant 0 : index
    %17 = vector.load %arg7[%c0_14, %c0_15] : memref<1x128xf32, #tpu.memory_space<vmem>>, vector<1x128xf32>
    %18 = vector.broadcast %17 : vector<1x128xf32> to vector<8x128xf32>
    %19 = arith.addf %16, %18 : vector<8x128xf32>
    %cst_16 = arith.constant 5.65685415 : f32
    %20 = vector.broadcast %cst_16 : f32 to vector<8x128xf32>
    %21 = arith.divf %9, %20 : vector<8x128xf32>
    %cst_17 = arith.constant dense<0.000000e+00> : vector<8x8xf32>
    %22 = tpu.matmul %21, %14, %cst_17 {dimension_numbers = #tpu.dot_dimension_numbers<[1], [1], [0], [0], [0, 0, 1, 0], [], []>} : vector<8x128xf32>, vector<8x128xf32>, vector<8x8xf32> -> vector<8x8xf32>
    %c0_18 = arith.constant 0 : index
    %c0_19 = arith.constant 0 : index
    %23 = vector.load %arg8[%c0_18, %c0_19] : memref<8x8xf32, #tpu.memory_space<vmem>>, vector<8x8xf32>
    tpu.vector_store %arg8[%c0_18, %c0_19], %22 {strides = array<i32>} : memref<8x8xf32, #tpu.memory_space<vmem>>, vector<8x8xf32>,
    %c0_20 = arith.constant 0 : index
    %c0_21 = arith.constant 0 : index
    %24 = vector.load %arg9[%c0_20, %c0_21] : memref<8x128xf32, #tpu.memory_space<vmem>>, vector<8x128xf32>
    tpu.vector_store %arg9[%c0_20, %c0_21], %19 {strides = array<i32>} : memref<8x128xf32, #tpu.memory_space<vmem>>, vector<8x128xf32>,
    return
  }
  func.func @transform_0(%arg0: i32) -> (i32, i32) {
    %c0_i32 = arith.constant 0 : i32
    %c0_i32_0 = arith.constant 0 : i32
    %c0_i32_1 = arith.constant 0 : i32
    return %c0_i32, %c0_i32_0 : i32, i32
  }
  func.func @transform_1(%arg0: i32) -> (i32, i32) {
    %c0_i32 = arith.constant 0 : i32
    %c0_i32_0 = arith.constant 0 : i32
    %c0_i32_1 = arith.constant 0 : i32
    return %c0_i32, %c0_i32_0 : i32, i32
  }
  func.func @transform_2(%arg0: i32) -> (i32, i32) {
    %c0_i32 = arith.constant 0 : i32
    %c0_i32_0 = arith.constant 0 : i32
    %c0_i32_1 = arith.constant 0 : i32
    return %c0_i32, %c0_i32_0 : i32, i32
  }
  func.func @transform_3(%arg0: i32) -> (i32, i32) {
    %c0_i32 = arith.constant 0 : i32
    %c0_i32_0 = arith.constant 0 : i32
    %c0_i32_1 = arith.constant 0 : i32
    return %c0_i32, %c0_i32_0 : i32, i32
  }
  func.func @transform_4(%arg0: i32) -> (i32, i32) {
    %c0_i32 = arith.constant 0 : i32
    %c0_i32_0 = arith.constant 0 : i32
    %c0_i32_1 = arith.constant 0 : i32
    return %c0_i32, %c0_i32_0 : i32, i32
  }
  func.func @transform_5(%arg0: i32) -> (i32, i32) {
    %c0_i32 = arith.constant 0 : i32
    %c0_i32_0 = arith.constant 0 : i32
    %c0_i32_1 = arith.constant 0 : i32
    return %c0_i32, %c0_i32_0 : i32, i32
  }
  func.func @transform_6(%arg0: i32) -> (i32, i32) {
    %c0_i32 = arith.constant 0 : i32
    %c0_i32_0 = arith.constant 0 : i32
    %c0_i32_1 = arith.constant 0 : i32
    return %c0_i32, %c0_i32_0 : i32, i32
  }
  func.func @transform_7(%arg0: i32) -> (i32, i32) {
    %c0_i32 = arith.constant 0 : i32
    %c0_i32_0 = arith.constant 0 : i32
    return %arg0, %c0_i32 : i32, i32
  }
  func.func @transform_8(%arg0: i32) -> (i32, i32) {
    %c0_i32 = arith.constant 0 : i32
    %c0_i32_0 = arith.constant 0 : i32
    return %arg0, %c0_i32 : i32, i32
  }
}

module attributes {stable_mosaic.version = 11 : i64} {
  func.func @kernel(%arg0: i32, %arg1: memref<8x128xf32, #tpu.memory_space<vmem>>, %arg2: memref<128x128xf32, #tpu.memory_space<vmem>>, %arg3: memref<1x128xf32, #tpu.memory_space<vmem>>, %arg4: memref<128x128xf32, #tpu.memory_space<vmem>>, %arg5: memref<1x128xf32, #tpu.memory_space<vmem>>, %arg6: memref<128x128xf32, #tpu.memory_space<vmem>>, %arg7: memref<1x128xf32, #tpu.memory_space<vmem>>, %arg8: memref<8x8xf32, #tpu.memory_space<vmem>>, %arg9: memref<8x128xf32, #tpu.memory_space<vmem>>) attributes {dimension_semantics = [#tpu.dimension_semantics<parallel>], iteration_bounds = array<i64: 1>, scalar_prefetch = 0 : i64, scratch_operands = 0 : i64, tpu.core_type = #tpu.core_type<tc>, window_params = [{pipeline_mode = #tpu.pipeline_mode<synchronous>, transform_indices = @transform_0, window_bounds = array<i64: 8, 128>}, {pipeline_mode = #tpu.pipeline_mode<synchronous>, transform_indices = @transform_1, window_bounds = array<i64: 128, 128>}, {pipeline_mode = #tpu.pipeline_mode<synchronous>, transform_indices = @transform_2, window_bounds = array<i64: 1, 128>}, {pipeline_mode = #tpu.pipeline_mode<synchronous>, transform_indices = @transform_3, window_bounds = array<i64: 128, 128>}, {pipeline_mode = #tpu.pipeline_mode<synchronous>, transform_indices = @transform_4, window_bounds = array<i64: 1, 128>}, {pipeline_mode = #tpu.pipeline_mode<synchronous>, transform_indices = @transform_5, window_bounds = array<i64: 128, 128>}, {pipeline_mode = #tpu.pipeline_mode<synchronous>, transform_indices = @transform_6, window_bounds = array<i64: 1, 128>}, {transform_indices = @transform_7, window_bounds = array<i64: 8, 8>}, {transform_indices = @transform_8, window_bounds = array<i64: 8, 128>}]} {
    %c8_i32 = arith.constant 8 : i32
    %0 = arith.muli %arg0, %c8_i32 : i32
    %1 = tpu.assume_multiple %0, 8 : i32
    %c0 = arith.constant 0 : index
    %c0_0 = arith.constant 0 : index
    %2 = vector.load %arg1[%c0, %c0_0] : memref<8x128xf32, #tpu.memory_space<vmem>>, vector<8x128xf32>
    %3 = arith.index_cast %1 : i32 to index
    %c0_1 = arith.constant 0 : index
    %4 = vector.load %arg1[%3, %c0_1] : memref<8x128xf32, #tpu.memory_space<vmem>>, vector<8x128xf32>
    %c0_2 = arith.constant 0 : index
    %c0_3 = arith.constant 0 : index
    %5 = vector.load %arg2[%c0_2, %c0_3] : memref<128x128xf32, #tpu.memory_space<vmem>>, vector<128x128xf32>
    %cst = arith.constant dense<0.000000e+00> : vector<8x128xf32>
    %6 = tpu.matmul %4, %5, %cst {dimension_numbers = #tpu.dot_dimension_numbers<[1], [0], [0], [1], [0, 0, 1, 1], [], []>} : vector<8x128xf32>, vector<128x128xf32>, vector<8x128xf32> -> vector<8x128xf32>
    %c0_4 = arith.constant 0 : index
    %c0_5 = arith.constant 0 : index
    %7 = vector.load %arg3[%c0_4, %c0_5] : memref<1x128xf32, #tpu.memory_space<vmem>>, vector<1x128xf32>
    %8 = vector.broadcast %7 : vector<1x128xf32> to vector<8x128xf32>
    %9 = arith.addf %6, %8 : vector<8x128xf32>
    %c0_6 = arith.constant 0 : index
    %c0_7 = arith.constant 0 : index
    %10 = vector.load %arg4[%c0_6, %c0_7] : memref<128x128xf32, #tpu.memory_space<vmem>>, vector<128x128xf32>
    %cst_8 = arith.constant dense<0.000000e+00> : vector<8x128xf32>
    %11 = tpu.matmul %2, %10, %cst_8 {dimension_numbers = #tpu.dot_dimension_numbers<[1], [0], [0], [1], [0, 0, 1, 1], [], []>} : vector<8x128xf32>, vector<128x128xf32>, vector<8x128xf32> -> vector<8x128xf32>
    %c0_9 = arith.constant 0 : index
    %c0_10 = arith.constant 0 : index
    %12 = vector.load %arg5[%c0_9, %c0_10] : memref<1x128xf32, #tpu.memory_space<vmem>>, vector<1x128xf32>
    %13 = vector.broadcast %12 : vector<1x128xf32> to vector<8x128xf32>
    %14 = arith.addf %11, %13 : vector<8x128xf32>
    %c0_11 = arith.constant 0 : index
    %c0_12 = arith.constant 0 : index
    %15 = vector.load %arg6[%c0_11, %c0_12] : memref<128x128xf32, #tpu.memory_space<vmem>>, vector<128x128xf32>
    %cst_13 = arith.constant dense<0.000000e+00> : vector<8x128xf32>
    %16 = tpu.matmul %4, %15, %cst_13 {dimension_numbers = #tpu.dot_dimension_numbers<[1], [0], [0], [1], [0, 0, 1, 1], [], []>} : vector<8x128xf32>, vector<128x128xf32>, vector<8x128xf32> -> vector<8x128xf32>
    %c0_14 = arith.constant 0 : index
    %c0_15 = arith.constant 0 : index
    %17 = vector.load %arg7[%c0_14, %c0_15] : memref<1x128xf32, #tpu.memory_space<vmem>>, vector<1x128xf32>
    %18 = vector.broadcast %17 : vector<1x128xf32> to vector<8x128xf32>
    %19 = arith.addf %16, %18 : vector<8x128xf32>
    %cst_16 = arith.constant 5.65685415 : f32
    %20 = vector.broadcast %cst_16 : f32 to vector<8x128xf32>
    %21 = arith.divf %9, %20 : vector<8x128xf32>
    %cst_17 = arith.constant dense<0.000000e+00> : vector<8x8xf32>
    %22 = tpu.matmul %21, %14, %cst_17 {dimension_numbers = #tpu.dot_dimension_numbers<[1], [1], [0], [0], [0, 0, 1, 0], [], []>} : vector<8x128xf32>, vector<8x128xf32>, vector<8x8xf32> -> vector<8x8xf32>
    %c0_18 = arith.constant 0 : index
    %c0_19 = arith.constant 0 : index
    %23 = vector.load %arg8[%c0_18, %c0_19] : memref<8x8xf32, #tpu.memory_space<vmem>>, vector<8x8xf32>
    tpu.vector_store %arg8[%c0_18, %c0_19], %22 {strides = array<i32>} : memref<8x8xf32, #tpu.memory_space<vmem>>, vector<8x8xf32>,
    %c0_20 = arith.constant 0 : index
    %c0_21 = arith.constant 0 : index
    %24 = vector.load %arg9[%c0_20, %c0_21] : memref<8x128xf32, #tpu.memory_space<vmem>>, vector<8x128xf32>
    tpu.vector_store %arg9[%c0_20, %c0_21], %19 {strides = array<i32>} : memref<8x128xf32, #tpu.memory_space<vmem>>, vector<8x128xf32>,
    return
  }
  func.func @transform_0(%arg0: i32) -> (i32, i32) {
    %c0_i32 = arith.constant 0 : i32
    %c0_i32_0 = arith.constant 0 : i32
    %c0_i32_1 = arith.constant 0 : i32
    return %c0_i32, %c0_i32_0 : i32, i32
  }
  func.func @transform_1(%arg0: i32) -> (i32, i32) {
    %c0_i32 = arith.constant 0 : i32
    %c0_i32_0 = arith.constant 0 : i32
    %c0_i32_1 = arith.constant 0 : i32
    return %c0_i32, %c0_i32_0 : i32, i32
  }
  func.func @transform_2(%arg0: i32) -> (i32, i32) {
    %c0_i32 = arith.constant 0 : i32
    %c0_i32_0 = arith.constant 0 : i32
    %c0_i32_1 = arith.constant 0 : i32
    return %c0_i32, %c0_i32_0 : i32, i32
  }
  func.func @transform_3(%arg0: i32) -> (i32, i32) {
    %c0_i32 = arith.constant 0 : i32
    %c0_i32_0 = arith.constant 0 : i32
    %c0_i32_1 = arith.constant 0 : i32
    return %c0_i32, %c0_i32_0 : i32, i32
  }
  func.func @transform_4(%arg0: i32) -> (i32, i32) {
    %c0_i32 = arith.constant 0 : i32
    %c0_i32_0 = arith.constant 0 : i32
    %c0_i32_1 = arith.constant 0 : i32
    return %c0_i32, %c0_i32_0 : i32, i32
  }
  func.func @transform_5(%arg0: i32) -> (i32, i32) {
    %c0_i32 = arith.constant 0 : i32
    %c0_i32_0 = arith.constant 0 : i32
    %c0_i32_1 = arith.constant 0 : i32
    return %c0_i32, %c0_i32_0 : i32, i32
  }
  func.func @transform_6(%arg0: i32) -> (i32, i32) {
    %c0_i32 = arith.constant 0 : i32
    %c0_i32_0 = arith.constant 0 : i32
    %c0_i32_1 = arith.constant 0 : i32
    return %c0_i32, %c0_i32_0 : i32, i32
  }
  func.func @transform_7(%arg0: i32) -> (i32, i32) {
    %c0_i32 = arith.constant 0 : i32
    %c0_i32_0 = arith.constant 0 : i32
    return %arg0, %c0_i32 : i32, i32
  }
  func.func @transform_8(%arg0: i32) -> (i32, i32) {
    %c0_i32 = arith.constant 0 : i32
    %c0_i32_0 = arith.constant 0 : i32
    return %arg0, %c0_i32 : i32, i32
  }
}

</mosaic_0001>

<bundles_post_ra>
// kernel: tpu_custom_call.1
= control target key start
LH: loop header
LB: loop body
LE: loop exit
PB: predicated region body
PF: predicated region fallthrough
CT: control target
= control target key end

     0   :  { %14 = vsyncpa [#allocation3], 0  ;;  %s1042_s0 = inlined_call_operand.hbm [shape: f32[8,128], index: 0, kind: input, shape index: {}]   ;;  %s1043_s1 = inlined_call_operand.hbm [shape: f32[128,128], index: 1, kind: input, shape index: {}]   ;;  %s1044_s2 = inlined_call_operand.vmem [shape: f32[1,128], index: 2, kind: input, shape index: {}]   ;;  %s1045_s3 = inlined_call_operand.hbm [shape: f32[128,128], index: 3, kind: input, shape index: {}]   ;;  %s1046_s4 = inlined_call_operand.vmem [shape: f32[1,128], index: 4, kind: input, shape index: {}]   ;;  %s1047_s5 = inlined_call_operand.hbm [shape: f32[128,128], index: 5, kind: input, shape index: {}]   ;;  %s1048_s6 = inlined_call_operand.vmem [shape: f32[1,128], index: 6, kind: input, shape index: {}]   ;;  %s1049_s7 = inlined_call_operand.hbm [shape: f32[8,8], index: 7, kind: output, shape index: {0}]   ;;  %s1050_s8 = inlined_call_operand.hbm [shape: f32[8,128], index: 8, kind: output, shape index: {1}]  }
   0x1   :  { %15 = vsyncpa [#allocation6], 0 }
   0x2   :  { %16 = vsyncpa [#allocation9], 0 }
   0x3   :  { %17 = vsyncpa [#allocation4], 0 }
   0x4   :  { %18 = vsyncpa [#allocation12], 0  ;;  %s863_s27 = smov [#allocation5]   ;;  %s721_s9 = scalar_lea.hbm %s1043_s1, 2048 }
   0x5   :  { %s34_s28 = sshll.u32 %s863_s27, 4  ;;  %p722_p0 = scmp.ne.s32.totalorder %s1043_s1, %s721_s9  ;;  %s35_s28 = int_to_ptr.vmem [resolvable:$true] %s34_s28 }
   0x6   :  { %p725_p1 = scmp.lt.u32.totalorder %s721_s9, %s1043_s1 }
   0x8   :  { %p727_p2 = pnand %p725_p1, %p722_p0 }
   0xa   :  { %730 = shalt.err (!%p727_p2)
}
   0xb   :  { %s731_s14 = scalar_lea.vmem %s35_s28, 2048  ;;  %p736_p4 = scmp.lt.s32.totalorder %s35_s28, %s35_s28 }
   0xc   :  { %p732_p3 = scmp.ne.s32.totalorder %s35_s28, %s731_s14  ;;  %p737_p5 = scmp.lt.s32.totalorder %s731_s14, %s731_s14 }
   0xe   :  { %p738_p6 = por %p737_p5, %p736_p4 }
  0x10   :  { %p739_p7 = pnand %p738_p6, %p732_p3 }
  0x12   :  { %742 = shalt.err (!%p739_p7)
}
  0x13   :  { %s864_s15 = smov 128   ;;  %s865_s16 = smov 8  }
  0x14   :  { %40 = dma.hbm_to_vmem [thread:$0]  %s1043_s1, 2048, %s35_s28, [#allocation6], %s864_s15, %s864_s15, %s865_s16  }
  0x15   :  { %s866_s19 = smov [#allocation2]   ;;  %s867_s21 = smov [#allocation7]  }
  0x16   :  { %s25_s20 = sshll.u32 %s866_s19, 4  ;;  %s48_s22 = sshll.u32 %s867_s21, 4  ;;  %s26_s20 = int_to_ptr.vmem [resolvable:$true] %s25_s20  ;;  %s49_s22 = int_to_ptr.vmem [resolvable:$true] %s48_s22 }
  0x17   :  { %s743_s25 = scalar_lea.hbm %s1042_s0, 128 }
  0x18   :  { %p744_p8 = scmp.ne.s32.totalorder %s1042_s0, %s743_s25  ;;  %p747_p9 = scmp.lt.u32.totalorder %s743_s25, %s1042_s0 }
  0x1a   :  { %p749_p10 = pnand %p747_p9, %p744_p8 }
  0x1c   :  { %752 = shalt.err (!%p749_p10)
}
  0x1d   :  { %s753_s1 = scalar_lea.vmem %s26_s20, 128  ;;  %p758_p12 = scmp.lt.s32.totalorder %s26_s20, %s26_s20 }
  0x1e   :  { %p754_p11 = scmp.ne.s32.totalorder %s26_s20, %s753_s1  ;;  %p759_p13 = scmp.lt.s32.totalorder %s753_s1, %s753_s1 }
  0x20   :  { %p760_p0 = por %p759_p13, %p758_p12 }
  0x22   :  { %p761_p1 = pnand %p760_p0, %p754_p11 }
  0x24   :  { %764 = shalt.err (!%p761_p1)
}
  0x25   :  { %28 = dma.hbm_to_vmem [thread:$0]  %s1042_s0, 128, %s26_s20, [#allocation3]  }
  0x26   :  { %s765_s12 = scalar_lea.hbm %s1045_s3, 2048 }
  0x27   :  { %p766_p2 = scmp.ne.s32.totalorder %s1045_s3, %s765_s12  ;;  %p769_p3 = scmp.lt.u32.totalorder %s765_s12, %s1045_s3 }
  0x29   :  { %p771_p4 = pnand %p769_p3, %p766_p2 }
  0x2b   :  { %774 = shalt.err (!%p771_p4)
}
  0x2c   :  { %s775_s19 = scalar_lea.vmem %s49_s22, 2048  ;;  %p780_p6 = scmp.lt.s32.totalorder %s49_s22, %s49_s22 }
  0x2d   :  { %p776_p5 = scmp.ne.s32.totalorder %s49_s22, %s775_s19  ;;  %p781_p7 = scmp.lt.s32.totalorder %s775_s19, %s775_s19 }
  0x2f   :  { %p782_p8 = por %p781_p7, %p780_p6 }
  0x31   :  { %p783_p9 = pnand %p782_p8, %p776_p5 }
  0x33   :  { %786 = shalt.err (!%p783_p9)
}
  0x34   :  { %54 = dma.hbm_to_vmem [thread:$0]  %s1045_s3, 2048, %s49_s22, [#allocation6], %s864_s15, %s864_s15, %s865_s16  }
  0x35   :  { %s868_s21 = smov [#allocation8]   ;;  %s787_s26 = scalar_lea.hbm %s1047_s5, 2048 }
  0x36   :  { %s62_s23 = sshll.u32 %s868_s21, 4  ;;  %p788_p10 = scmp.ne.s32.totalorder %s1047_s5, %s787_s26  ;;  %s63_s23 = int_to_ptr.vmem [resolvable:$true] %s62_s23 }
  0x37   :  { %p791_p11 = scmp.lt.u32.totalorder %s787_s26, %s1047_s5 }
  0x39   :  { %p793_p12 = pnand %p791_p11, %p788_p10 }
  0x3b   :  { %796 = shalt.err (!%p793_p12)
}
  0x3c   :  { %s797_s28 = scalar_lea.vmem %s63_s23, 2048  ;;  %p802_p0 = scmp.lt.s32.totalorder %s63_s23, %s63_s23 }
  0x3d   :  { %p798_p13 = scmp.ne.s32.totalorder %s63_s23, %s797_s28  ;;  %p803_p1 = scmp.lt.s32.totalorder %s797_s28, %s797_s28 }
  0x3f   :  { %p804_p2 = por %p803_p1, %p802_p0 }
  0x41   :  { %p805_p3 = pnand %p804_p2, %p798_p13 }
  0x43   :  { %808 = shalt.err (!%p805_p3)
}
  0x44   :  { %68 = dma.hbm_to_vmem [thread:$0]  %s1047_s5, 2048, %s63_s23, [#allocation9], %s864_s15, %s864_s15, %s865_s16  }
  0x45   :  { %853 = dma.done.wait [#allocation3], 128  }
  0x46   :  { %854 = vsyncadd [#allocation3], 4294967168 }
  0x47   :  { %855 = dma.done.wait [#allocation6], 4096  }
  0x48   :  { %856 = vsyncadd [#allocation6], 4294963200 }
  0x49   :  { %857 = dma.done.wait [#allocation9], 2048  }
  0x4a   :  { %858 = vsyncadd [#allocation9], 4294965248  ;;  %v869_v0 = vmov 0.0|0.0   ;;  %vm870_vm0 = vmmov 0   ;;  %v871_v1 = vmov 0.0   ;;  %v180_v2 = vld [vmem:[#allocation7] sm:$0xff] }
  0x4b   :  { %662 = vmatprep.subr.bf16.mxu1 %v869_v0  ;;  %638 = vmatprep.subr.bf16.mxu0 %v869_v0  ;;  %v181_v3 = vld [vmem:[#allocation7 + $0x8] sm:$0xff]  ;;  %v87_v4 = vld [vmem:[#allocation5] sm:$0xff]  ;;  %v182_v7 = vld [vmem:[#allocation7 + $0x10] sm:$0xff] }
  0x4c   :  { %595 = vmatprep.mubr.msk.f32.mxu1 %vm870_vm0, %v871_v1  ;;  %560 = vmatprep.mubr.msk.f32.mxu0 %vm870_vm0, %v871_v1  ;;  %v663_v5 = vpack.c.bf16 %v181_v3, %v180_v2  ;;  %v88_v6 = vld [vmem:[#allocation5 + $0x8] sm:$0xff]  ;;  %v183_v8 = vld [vmem:[#allocation7 + $0x18] sm:$0xff]  ;;  %v89_v10 = vld [vmem:[#allocation5 + $0x10] sm:$0xff] }
  0x4d   :  { %v639_v9 = vpack.c.bf16 %v88_v6, %v87_v4  ;;  %v90_v11 = vld [vmem:[#allocation5 + $0x18] sm:$0xff]  ;;  %v666_v12 = vpack.c.bf16 %v183_v8, %v182_v7  ;;  %v184_v14 = vld [vmem:[#allocation7 + $0x20] sm:$0xff]  ;;  %v185_v15 = vld [vmem:[#allocation7 + $0x28] sm:$0xff] }
  0x4e   :  { %664 = vmatpush3.bf16.msra.mxu1 %v663_v5  ;;  %v642_v13 = vpack.c.bf16 %v90_v11, %v89_v10  ;;  %v91_v16 = vld [vmem:[#allocation5 + $0x20] sm:$0xff]  ;;  %v92_v17 = vld [vmem:[#allocation5 + $0x28] sm:$0xff]  ;;  %v669_v18 = vpack.c.bf16 %v185_v15, %v184_v14  ;;  %v186_v20 = vld [vmem:[#allocation7 + $0x30] sm:$0xff] }
  0x4f   :  { %640 = vmatpush3.bf16.msra.mxu0 %v639_v9  ;;  %665 = vmatprep.subr.bf16.mxu1 %v869_v0  ;;  %v645_v19 = vpack.c.bf16 %v92_v17, %v91_v16  ;;  %v187_v21 = vld [vmem:[#allocation7 + $0x38] sm:$0xff]  ;;  %v93_v22 = vld [vmem:[#allocation5 + $0x30] sm:$0xff]  ;;  %v188_v26 = vld [vmem:[#allocation7 + $0x40] sm:$0xff] }
  0x50   :  { %641 = vmatprep.subr.bf16.mxu0 %v869_v0  ;;  %v94_v23 = vld [vmem:[#allocation5 + $0x38] sm:$0xff]  ;;  %v672_v24 = vpack.c.bf16 %v187_v21, %v186_v20  ;;  %v189_v27 = vld [vmem:[#allocation7 + $0x48] sm:$0xff]  ;;  %v95_v28 = vld [vmem:[#allocation5 + $0x40] sm:$0xff] }
  0x51   :  { %v648_v25 = vpack.c.bf16 %v94_v23, %v93_v22  ;;  %v96_v29 = vld [vmem:[#allocation5 + $0x48] sm:$0xff]  ;;  %v675_v30 = vpack.c.bf16 %v189_v27, %v188_v26  ;;  %v190_v32 = vld [vmem:[#allocation7 + $0x50] sm:$0xff]  ;;  %v191_v33 = vld [vmem:[#allocation7 + $0x58] sm:$0xff] }
  0x52   :  { %667 = vmatpush3.bf16.msra.mxu1 %v666_v12  ;;  %v651_v31 = vpack.c.bf16 %v96_v29, %v95_v28  ;;  %v97_v34 = vld [vmem:[#allocation5 + $0x50] sm:$0xff]  ;;  %v98_v35 = vld [vmem:[#allocation5 + $0x58] sm:$0xff]  ;;  %v678_v36 = vpack.c.bf16 %v191_v33, %v190_v32  ;;  %v192_v38 = vld [vmem:[#allocation7 + $0x60] sm:$0xff] }
  0x53   :  { %643 = vmatpush3.bf16.msra.mxu0 %v642_v13  ;;  %668 = vmatprep.subr.bf16.mxu1 %v869_v0  ;;  %v654_v37 = vpack.c.bf16 %v98_v35, %v97_v34  ;;  %v193_v39 = vld [vmem:[#allocation7 + $0x68] sm:$0xff]  ;;  %v99_v40 = vld [vmem:[#allocation5 + $0x60] sm:$0xff]  ;;  %v194_v44 = vld [vmem:[#allocation7 + $0x70] sm:$0xff] }
  0x54   :  { %644 = vmatprep.subr.bf16.mxu0 %v869_v0  ;;  %v100_v41 = vld [vmem:[#allocation5 + $0x68] sm:$0xff]  ;;  %v681_v42 = vpack.c.bf16 %v193_v39, %v192_v38  ;;  %v195_v45 = vld [vmem:[#allocation7 + $0x78] sm:$0xff]  ;;  %v101_v46 = vld [vmem:[#allocation5 + $0x70] sm:$0xff] }
  0x55   :  { %v657_v43 = vpack.c.bf16 %v100_v41, %v99_v40  ;;  %v102_v47 = vld [vmem:[#allocation5 + $0x78] sm:$0xff]  ;;  %v684_v48 = vpack.c.bf16 %v195_v45, %v194_v44  ;;  %v273_v50 = vld [vmem:[#allocation8] sm:$0xff]  ;;  %v274_v51 = vld [vmem:[#allocation8 + $0x8] sm:$0xff] }
  0x56   :  { %670 = vmatpush3.bf16.msra.mxu1 %v669_v18  ;;  %v660_v49 = vpack.c.bf16 %v102_v47, %v101_v46  ;;  %v84_v52 = vld [vmem:[#allocation2] sm:$0xff]  ;;  %v687_v53 = vpack.c.bf16 %v274_v51, %v273_v50  ;;  %v275_v54 = vld [vmem:[#allocation8 + $0x10] sm:$0xff]  ;;  %v277_v57 = vld [vmem:[#allocation8 + $0x20] sm:$0xff] }
  0x57   :  { %646 = vmatpush3.bf16.msra.mxu0 %v645_v19  ;;  %671 = vmatprep.subr.bf16.mxu1 %v869_v0  ;;  %v276_v55 = vld [vmem:[#allocation8 + $0x18] sm:$0xff]  ;;  %v278_v58 = vld [vmem:[#allocation8 + $0x28] sm:$0xff]  ;;  %v279_v60 = vld [vmem:[#allocation8 + $0x30] sm:$0xff] }
  0x58   :  { %647 = vmatprep.subr.bf16.mxu0 %v869_v0  ;;  %v690_v56 = vpack.c.bf16 %v276_v55, %v275_v54  ;;  %v693_v59 = vpack.c.bf16 %v278_v58, %v277_v57  ;;  %v280_v61 = vld [vmem:[#allocation8 + $0x38] sm:$0xff]  ;;  %v281_v63 = vld [vmem:[#allocation8 + $0x40] sm:$0xff]  ;;  %v282_v2 = vld [vmem:[#allocation8 + $0x48] sm:$0xff] }
  0x59   :  { %v696_v62 = vpack.c.bf16 %v280_v61, %v279_v60  ;;  %v699_v3 = vpack.c.bf16 %v282_v2, %v281_v63  ;;  %v284_v4 = vld [vmem:[#allocation8 + $0x58] sm:$0xff]  ;;  %v285_v6 = vld [vmem:[#allocation8 + $0x60] sm:$0xff]  ;;  %v286_v7 = vld [vmem:[#allocation8 + $0x68] sm:$0xff] }
  0x5a   :  { %673 = vmatpush3.bf16.msra.mxu1 %v672_v24  ;;  %v705_v8 = vpack.c.bf16 %v286_v7, %v285_v6  ;;  %v287_v9 = vld [vmem:[#allocation8 + $0x70] sm:$0xff]  ;;  %v288_v10 = vld [vmem:[#allocation8 + $0x78] sm:$0xff] }
  0x5b   :  { %649 = vmatpush3.bf16.msra.mxu0 %v648_v25  ;;  %674 = vmatprep.subr.bf16.mxu1 %v869_v0  ;;  %v708_v11 = vpack.c.bf16 %v288_v10, %v287_v9  ;;  %v473_v12 = vld [vmem:[%s1046_s4] ss:$0 sm:$0xff]  ;;  %s872_s4 = smov [#allocation11]  }
  0x5c   :  { %650 = vmatprep.subr.bf16.mxu0 %v869_v0  ;;  %v472_v13 = vld [vmem:[%s1044_s2] ss:$0 sm:$0xff]  ;;  %s457_s12 = sshll.u32 %s872_s4, 4  ;;  %s458_s12 = int_to_ptr.vmem [resolvable:$true] %s457_s12 }
  0x5d   :  { %v474_v20 = vld [vmem:[%s1048_s6] ss:$0 sm:$0xff]  ;;  %s809_s2 = scalar_lea.vmem %s458_s12, 128  ;;  %p814_p5 = scmp.lt.s32.totalorder %s458_s12, %s458_s12 }
  0x5e   :  { %676 = vmatpush3.bf16.msra.mxu1 %v675_v30  ;;  %p810_p4 = scmp.ne.s32.totalorder %s458_s12, %s809_s2  ;;  %p815_p6 = scmp.lt.s32.totalorder %s809_s2, %s809_s2 }
  0x5f   :  { %652 = vmatpush3.bf16.msra.mxu0 %v651_v31  ;;  %677 = vmatprep.subr.bf16.mxu1 %v869_v0 }
  0x60   :  { %653 = vmatprep.subr.bf16.mxu0 %v869_v0  ;;  %p816_p7 = por %p815_p6, %p814_p5 }
  0x62   :  { %679 = vmatpush3.bf16.msra.mxu1 %v678_v36  ;;  %p817_p8 = pnand %p816_p7, %p810_p4 }
  0x63   :  { %655 = vmatpush3.bf16.msra.mxu0 %v654_v37  ;;  %680 = vmatprep.subr.bf16.mxu1 %v869_v0 }
  0x64   :  { %656 = vmatprep.subr.bf16.mxu0 %v869_v0 }
  0x66   :  { %682 = vmatpush3.bf16.msra.mxu1 %v681_v42 }
  0x67   :  { %658 = vmatpush3.bf16.msra.mxu0 %v657_v43  ;;  %683 = vmatprep.subr.bf16.mxu1 %v869_v0 }
  0x68   :  { %659 = vmatprep.subr.bf16.mxu0 %v869_v0 }
  0x6a   :  { %685 = vmatpush3.bf16.msra.mxu1 %v684_v48 }
  0x6b   :  { %661 = vmatpush3.bf16.msra.mxu0 %v660_v49  ;;  %633 = vmatprep.subr.mxu1 %v871_v1 }
  0x6c   :  { %686 = vmatprep.subr.bf16.mxu0 %v869_v0 }
  0x6d   :  { %596 = vmatmul.mubr.f32.vlgmr.msra.gmra.mrb[0].mxu1 %v84_v52 }
  0x6e   :  { %561 = vmatmul.mubr.f32.vlgmr.msra.gmra.mrb[0].mxu0 %v84_v52  ;;  %635 = vmatprep.mubr.msk.f32.mxu1 %vm870_vm0, %v871_v1 }
  0x6f   :  { %688 = vmatpush3.bf16.msra.mxu0 %v687_v53  ;;  %630 = vmatprep.mubr.msk.f32.mxu0 %vm870_vm0, %v871_v1  ;;  %v283_v1 = vld [vmem:[#allocation8 + $0x50] sm:$0xff] }
  0x70   :  { %689 = vmatprep.subr.bf16.mxu0 %v869_v0  ;;  %v702_v5 = vpack.c.bf16 %v284_v4, %v283_v1 }
  0x73   :  { %691 = vmatpush3.bf16.msra.mxu0 %v690_v56 }
  0x74   :  { %692 = vmatprep.subr.bf16.mxu0 %v869_v0 }
  0x77   :  { %694 = vmatpush3.bf16.msra.mxu0 %v693_v59 }
  0x78   :  { %695 = vmatprep.subr.bf16.mxu0 %v869_v0 }
  0x7b   :  { %697 = vmatpush3.bf16.msra.mxu0 %v696_v62 }
  0x7c   :  { %698 = vmatprep.subr.bf16.mxu0 %v869_v0 }
  0x7f   :  { %700 = vmatpush3.bf16.msra.mxu0 %v699_v3 }
  0x80   :  { %701 = vmatprep.subr.bf16.mxu0 %v869_v0 }
  0x83   :  { %703 = vmatpush3.bf16.msra.mxu0 %v702_v5 }
  0x84   :  { %704 = vmatprep.subr.bf16.mxu0 %v869_v0 }
  0x87   :  { %706 = vmatpush3.bf16.msra.mxu0 %v705_v8 }
  0x88   :  { %707 = vmatprep.subr.bf16.mxu0 %v869_v0 }
  0x8b   :  { %709 = vmatpush3.bf16.msra.mxu0 %v708_v11 }
  0x8e   :  { %631 = vmatmul.mubr.f32.vlgmr.msra.gmra.mrb[2].mxu0 %v84_v52 }
 0x140   :  { %v269_v14 = vpop.f32.mrb[0].mxu1 }
 0x141   :  { %v270_v15 = vadd.f32 %v473_v12, %v269_v14  ;;  %v176_v16 = vpop.f32.mrb[0].mxu0  ;;  %v597_v17 = vpop.f32.mrb[1].mxu1 }
 0x142   :  { %v177_v18 = vadd.f32 %v472_v13, %v176_v16  ;;  %v562_v19 = vpop.f32.mrb[1].mxu0 }
 0x143   :  { %634 = vmatpush3.xpose.msra.mxu1 %v270_v15 }
 0x144   :  { %v367_v0 = vmul.f32 0.17677669, %v177_v18 }
 0x146   :  { %636 = vmatmul.mubr.f32.vlgmr.msra.gmra.mrb[2].mxu1 %v367_v0 }
 0x161   :  { %v362_v21 = vpop.f32.mrb[2].mxu0 }
 0x162   :  { %v363_v22 = vadd.f32 %v474_v20, %v362_v21  ;;  %v632_v23 = vpop.f32.mrb[3].mxu0 }
 0x164   :  { %440 = vst [vmem:[#allocation11] sm:$0xff] %v363_v22 }
 0x165   :  { %820 = shalt.err (!%p817_p8)
}
 0x166   :  { %s821_s17 = scalar_lea.hbm %s1050_s8, 128 }
 0x167   :  { %p822_p9 = scmp.ne.s32.totalorder %s1050_s8, %s821_s17  ;;  %p825_p10 = scmp.lt.u32.totalorder %s821_s17, %s1050_s8 }
 0x169   :  { %p827_p11 = pnand %p825_p10, %p822_p9 }
 0x16b   :  { %830 = shalt.err (!%p827_p11)
}
 0x16c   :  { %460 = dma.vmem_to_hbm [thread:$0]  %s458_s12, 128, %s1050_s8, [#allocation12]   ;;  %vm438_vm1 = vcmask 64512  }
 0x16d   :  { %s873_s23 = smov [#allocation10]  }
 0x16e   :  { %s447_s24 = sshll.u32 %s873_s23, 4  ;;  %s448_s24 = int_to_ptr.vmem [resolvable:$true] %s447_s24 }
 0x16f   :  { %s831_s25 = scalar_lea.vmem %s448_s24, 128  ;;  %p836_p13 = scmp.lt.s32.totalorder %s448_s24, %s448_s24 }
 0x170   :  { %p832_p12 = scmp.ne.s32.totalorder %s448_s24, %s831_s25  ;;  %p837_p0 = scmp.lt.s32.totalorder %s831_s25, %s831_s25 }
 0x172   :  { %p838_p1 = por %p837_p0, %p836_p13 }
 0x174   :  { %p839_p2 = pnand %p838_p1, %p832_p12 }
 0x219   :  { %v434_v24 = vpop.f32.mrb[2].mxu1 }
 0x21a   :  { %v637_v25 = vpop.f32.mrb[3].mxu1  ;;  %439 = vst.msk [vmem:[#allocation10] sm:$0xff] %vm438_vm1, %v434_v24 }
 0x21b   :  { %842 = shalt.err (!%p839_p2)
}
 0x21c   :  { %s843_s29 = scalar_lea.hbm %s1049_s7, 128 }
 0x21d   :  { %p844_p3 = scmp.ne.s32.totalorder %s1049_s7, %s843_s29  ;;  %p847_p4 = scmp.lt.u32.totalorder %s843_s29, %s1049_s7 }
 0x21f   :  { %p849_p5 = pnand %p847_p4, %p844_p3 }
 0x221   :  { %852 = shalt.err (!%p849_p5)
}
 0x222   :  { %450 = dma.vmem_to_hbm [thread:$0]  %s448_s24, 128, %s1049_s7, [#allocation4]  }
 0x223   :  { %859 = dma.done.wait [#allocation4], 128  }
 0x224   :  { %860 = vsyncadd [#allocation4], 4294967168 }
 0x225   :  { %861 = dma.done.wait [#allocation12], 128  }
 0x226   :  { %862 = vsyncadd [#allocation12], 4294967168 }
 0x227   :  { %467 = vsyncpa [#allocation3], 1 }
 0x228   :  { %468 = vsyncpa [#allocation6], 1 }
 0x229   :  { %469 = vsyncpa [#allocation9], 1 }
 0x22a   :  { %470 = vsyncpa [#allocation4], 1 }
 0x22b   :  { %471 = vsyncpa [#allocation12], 1 }

// kernel: tpu_custom_call.1
= control target key start
LH: loop header
LB: loop body
LE: loop exit
PB: predicated region body
PF: predicated region fallthrough
CT: control target
= control target key end

     0   :  { %14 = vsyncpa [#allocation3], 0  ;;  %s1042_s0 = inlined_call_operand.hbm [shape: f32[8,128], index: 0, kind: input, shape index: {}]   ;;  %s1043_s1 = inlined_call_operand.hbm [shape: f32[128,128], index: 1, kind: input, shape index: {}]   ;;  %s1044_s2 = inlined_call_operand.vmem [shape: f32[1,128], index: 2, kind: input, shape index: {}]   ;;  %s1045_s3 = inlined_call_operand.hbm [shape: f32[128,128], index: 3, kind: input, shape index: {}]   ;;  %s1046_s4 = inlined_call_operand.vmem [shape: f32[1,128], index: 4, kind: input, shape index: {}]   ;;  %s1047_s5 = inlined_call_operand.hbm [shape: f32[128,128], index: 5, kind: input, shape index: {}]   ;;  %s1048_s6 = inlined_call_operand.vmem [shape: f32[1,128], index: 6, kind: input, shape index: {}]   ;;  %s1049_s7 = inlined_call_operand.hbm [shape: f32[8,8], index: 7, kind: output, shape index: {0}]   ;;  %s1050_s8 = inlined_call_operand.hbm [shape: f32[8,128], index: 8, kind: output, shape index: {1}]  }
   0x1   :  { %15 = vsyncpa [#allocation6], 0 }
   0x2   :  { %16 = vsyncpa [#allocation9], 0 }
   0x3   :  { %17 = vsyncpa [#allocation4], 0 }
   0x4   :  { %18 = vsyncpa [#allocation12], 0  ;;  %s863_s27 = smov [#allocation5]   ;;  %s721_s9 = scalar_lea.hbm %s1043_s1, 2048 }
   0x5   :  { %s34_s28 = sshll.u32 %s863_s27, 4  ;;  %p722_p0 = scmp.ne.s32.totalorder %s1043_s1, %s721_s9  ;;  %s35_s28 = int_to_ptr.vmem [resolvable:$true] %s34_s28 }
   0x6   :  { %p725_p1 = scmp.lt.u32.totalorder %s721_s9, %s1043_s1 }
   0x8   :  { %p727_p2 = pnand %p725_p1, %p722_p0 }
   0xa   :  { %730 = shalt.err (!%p727_p2)
}
   0xb   :  { %s731_s14 = scalar_lea.vmem %s35_s28, 2048  ;;  %p736_p4 = scmp.lt.s32.totalorder %s35_s28, %s35_s28 }
   0xc   :  { %p732_p3 = scmp.ne.s32.totalorder %s35_s28, %s731_s14  ;;  %p737_p5 = scmp.lt.s32.totalorder %s731_s14, %s731_s14 }
   0xe   :  { %p738_p6 = por %p737_p5, %p736_p4 }
  0x10   :  { %p739_p7 = pnand %p738_p6, %p732_p3 }
  0x12   :  { %742 = shalt.err (!%p739_p7)
}
  0x13   :  { %s864_s15 = smov 128   ;;  %s865_s16 = smov 8  }
  0x14   :  { %40 = dma.hbm_to_vmem [thread:$0]  %s1043_s1, 2048, %s35_s28, [#allocation6], %s864_s15, %s864_s15, %s865_s16  }
  0x15   :  { %s866_s19 = smov [#allocation2]   ;;  %s867_s21 = smov [#allocation7]  }
  0x16   :  { %s25_s20 = sshll.u32 %s866_s19, 4  ;;  %s48_s22 = sshll.u32 %s867_s21, 4  ;;  %s26_s20 = int_to_ptr.vmem [resolvable:$true] %s25_s20  ;;  %s49_s22 = int_to_ptr.vmem [resolvable:$true] %s48_s22 }
  0x17   :  { %s743_s25 = scalar_lea.hbm %s1042_s0, 128 }
  0x18   :  { %p744_p8 = scmp.ne.s32.totalorder %s1042_s0, %s743_s25  ;;  %p747_p9 = scmp.lt.u32.totalorder %s743_s25, %s1042_s0 }
  0x1a   :  { %p749_p10 = pnand %p747_p9, %p744_p8 }
  0x1c   :  { %752 = shalt.err (!%p749_p10)
}
  0x1d   :  { %s753_s1 = scalar_lea.vmem %s26_s20, 128  ;;  %p758_p12 = scmp.lt.s32.totalorder %s26_s20, %s26_s20 }
  0x1e   :  { %p754_p11 = scmp.ne.s32.totalorder %s26_s20, %s753_s1  ;;  %p759_p13 = scmp.lt.s32.totalorder %s753_s1, %s753_s1 }
  0x20   :  { %p760_p0 = por %p759_p13, %p758_p12 }
  0x22   :  { %p761_p1 = pnand %p760_p0, %p754_p11 }
  0x24   :  { %764 = shalt.err (!%p761_p1)
}
  0x25   :  { %28 = dma.hbm_to_vmem [thread:$0]  %s1042_s0, 128, %s26_s20, [#allocation3]  }
  0x26   :  { %s765_s12 = scalar_lea.hbm %s1045_s3, 2048 }
  0x27   :  { %p766_p2 = scmp.ne.s32.totalorder %s1045_s3, %s765_s12  ;;  %p769_p3 = scmp.lt.u32.totalorder %s765_s12, %s1045_s3 }
  0x29   :  { %p771_p4 = pnand %p769_p3, %p766_p2 }
  0x2b   :  { %774 = shalt.err (!%p771_p4)
}
  0x2c   :  { %s775_s19 = scalar_lea.vmem %s49_s22, 2048  ;;  %p780_p6 = scmp.lt.s32.totalorder %s49_s22, %s49_s22 }
  0x2d   :  { %p776_p5 = scmp.ne.s32.totalorder %s49_s22, %s775_s19  ;;  %p781_p7 = scmp.lt.s32.totalorder %s775_s19, %s775_s19 }
  0x2f   :  { %p782_p8 = por %p781_p7, %p780_p6 }
  0x31   :  { %p783_p9 = pnand %p782_p8, %p776_p5 }
  0x33   :  { %786 = shalt.err (!%p783_p9)
}
  0x34   :  { %54 = dma.hbm_to_vmem [thread:$0]  %s1045_s3, 2048, %s49_s22, [#allocation6], %s864_s15, %s864_s15, %s865_s16  }
  0x35   :  { %s868_s21 = smov [#allocation8]   ;;  %s787_s26 = scalar_lea.hbm %s1047_s5, 2048 }
  0x36   :  { %s62_s23 = sshll.u32 %s868_s21, 4  ;;  %p788_p10 = scmp.ne.s32.totalorder %s1047_s5, %s787_s26  ;;  %s63_s23 = int_to_ptr.vmem [resolvable:$true] %s62_s23 }
  0x37   :  { %p791_p11 = scmp.lt.u32.totalorder %s787_s26, %s1047_s5 }
  0x39   :  { %p793_p12 = pnand %p791_p11, %p788_p10 }
  0x3b   :  { %796 = shalt.err (!%p793_p12)
}
  0x3c   :  { %s797_s28 = scalar_lea.vmem %s63_s23, 2048  ;;  %p802_p0 = scmp.lt.s32.totalorder %s63_s23, %s63_s23 }
  0x3d   :  { %p798_p13 = scmp.ne.s32.totalorder %s63_s23, %s797_s28  ;;  %p803_p1 = scmp.lt.s32.totalorder %s797_s28, %s797_s28 }
  0x3f   :  { %p804_p2 = por %p803_p1, %p802_p0 }
  0x41   :  { %p805_p3 = pnand %p804_p2, %p798_p13 }
  0x43   :  { %808 = shalt.err (!%p805_p3)
}
  0x44   :  { %68 = dma.hbm_to_vmem [thread:$0]  %s1047_s5, 2048, %s63_s23, [#allocation9], %s864_s15, %s864_s15, %s865_s16  }
  0x45   :  { %853 = dma.done.wait [#allocation3], 128  }
  0x46   :  { %854 = vsyncadd [#allocation3], 4294967168 }
  0x47   :  { %855 = dma.done.wait [#allocation6], 4096  }
  0x48   :  { %856 = vsyncadd [#allocation6], 4294963200 }
  0x49   :  { %857 = dma.done.wait [#allocation9], 2048  }
  0x4a   :  { %858 = vsyncadd [#allocation9], 4294965248  ;;  %v869_v0 = vmov 0.0|0.0   ;;  %vm870_vm0 = vmmov 0   ;;  %v871_v1 = vmov 0.0   ;;  %v180_v2 = vld [vmem:[#allocation7] sm:$0xff] }
  0x4b   :  { %662 = vmatprep.subr.bf16.mxu1 %v869_v0  ;;  %638 = vmatprep.subr.bf16.mxu0 %v869_v0  ;;  %v181_v3 = vld [vmem:[#allocation7 + $0x8] sm:$0xff]  ;;  %v87_v4 = vld [vmem:[#allocation5] sm:$0xff]  ;;  %v182_v7 = vld [vmem:[#allocation7 + $0x10] sm:$0xff] }
  0x4c   :  { %595 = vmatprep.mubr.msk.f32.mxu1 %vm870_vm0, %v871_v1  ;;  %560 = vmatprep.mubr.msk.f32.mxu0 %vm870_vm0, %v871_v1  ;;  %v663_v5 = vpack.c.bf16 %v181_v3, %v180_v2  ;;  %v88_v6 = vld [vmem:[#allocation5 + $0x8] sm:$0xff]  ;;  %v183_v8 = vld [vmem:[#allocation7 + $0x18] sm:$0xff]  ;;  %v89_v10 = vld [vmem:[#allocation5 + $0x10] sm:$0xff] }
  0x4d   :  { %v639_v9 = vpack.c.bf16 %v88_v6, %v87_v4  ;;  %v90_v11 = vld [vmem:[#allocation5 + $0x18] sm:$0xff]  ;;  %v666_v12 = vpack.c.bf16 %v183_v8, %v182_v7  ;;  %v184_v14 = vld [vmem:[#allocation7 + $0x20] sm:$0xff]  ;;  %v185_v15 = vld [vmem:[#allocation7 + $0x28] sm:$0xff] }
  0x4e   :  { %664 = vmatpush3.bf16.msra.mxu1 %v663_v5  ;;  %v642_v13 = vpack.c.bf16 %v90_v11, %v89_v10  ;;  %v91_v16 = vld [vmem:[#allocation5 + $0x20] sm:$0xff]  ;;  %v92_v17 = vld [vmem:[#allocation5 + $0x28] sm:$0xff]  ;;  %v669_v18 = vpack.c.bf16 %v185_v15, %v184_v14  ;;  %v186_v20 = vld [vmem:[#allocation7 + $0x30] sm:$0xff] }
  0x4f   :  { %640 = vmatpush3.bf16.msra.mxu0 %v639_v9  ;;  %665 = vmatprep.subr.bf16.mxu1 %v869_v0  ;;  %v645_v19 = vpack.c.bf16 %v92_v17, %v91_v16  ;;  %v187_v21 = vld [vmem:[#allocation7 + $0x38] sm:$0xff]  ;;  %v93_v22 = vld [vmem:[#allocation5 + $0x30] sm:$0xff]  ;;  %v188_v26 = vld [vmem:[#allocation7 + $0x40] sm:$0xff] }
  0x50   :  { %641 = vmatprep.subr.bf16.mxu0 %v869_v0  ;;  %v94_v23 = vld [vmem:[#allocation5 + $0x38] sm:$0xff]  ;;  %v672_v24 = vpack.c.bf16 %v187_v21, %v186_v20  ;;  %v189_v27 = vld [vmem:[#allocation7 + $0x48] sm:$0xff]  ;;  %v95_v28 = vld [vmem:[#allocation5 + $0x40] sm:$0xff] }
  0x51   :  { %v648_v25 = vpack.c.bf16 %v94_v23, %v93_v22  ;;  %v96_v29 = vld [vmem:[#allocation5 + $0x48] sm:$0xff]  ;;  %v675_v30 = vpack.c.bf16 %v189_v27, %v188_v26  ;;  %v190_v32 = vld [vmem:[#allocation7 + $0x50] sm:$0xff]  ;;  %v191_v33 = vld [vmem:[#allocation7 + $0x58] sm:$0xff] }
  0x52   :  { %667 = vmatpush3.bf16.msra.mxu1 %v666_v12  ;;  %v651_v31 = vpack.c.bf16 %v96_v29, %v95_v28  ;;  %v97_v34 = vld [vmem:[#allocation5 + $0x50] sm:$0xff]  ;;  %v98_v35 = vld [vmem:[#allocation5 + $0x58] sm:$0xff]  ;;  %v678_v36 = vpack.c.bf16 %v191_v33, %v190_v32  ;;  %v192_v38 = vld [vmem:[#allocation7 + $0x60] sm:$0xff] }
  0x53   :  { %643 = vmatpush3.bf16.msra.mxu0 %v642_v13  ;;  %668 = vmatprep.subr.bf16.mxu1 %v869_v0  ;;  %v654_v37 = vpack.c.bf16 %v98_v35, %v97_v34  ;;  %v193_v39 = vld [vmem:[#allocation7 + $0x68] sm:$0xff]  ;;  %v99_v40 = vld [vmem:[#allocation5 + $0x60] sm:$0xff]  ;;  %v194_v44 = vld [vmem:[#allocation7 + $0x70] sm:$0xff] }
  0x54   :  { %644 = vmatprep.subr.bf16.mxu0 %v869_v0  ;;  %v100_v41 = vld [vmem:[#allocation5 + $0x68] sm:$0xff]  ;;  %v681_v42 = vpack.c.bf16 %v193_v39, %v192_v38  ;;  %v195_v45 = vld [vmem:[#allocation7 + $0x78] sm:$0xff]  ;;  %v101_v46 = vld [vmem:[#allocation5 + $0x70] sm:$0xff] }
  0x55   :  { %v657_v43 = vpack.c.bf16 %v100_v41, %v99_v40  ;;  %v102_v47 = vld [vmem:[#allocation5 + $0x78] sm:$0xff]  ;;  %v684_v48 = vpack.c.bf16 %v195_v45, %v194_v44  ;;  %v273_v50 = vld [vmem:[#allocation8] sm:$0xff]  ;;  %v274_v51 = vld [vmem:[#allocation8 + $0x8] sm:$0xff] }
  0x56   :  { %670 = vmatpush3.bf16.msra.mxu1 %v669_v18  ;;  %v660_v49 = vpack.c.bf16 %v102_v47, %v101_v46  ;;  %v84_v52 = vld [vmem:[#allocation2] sm:$0xff]  ;;  %v687_v53 = vpack.c.bf16 %v274_v51, %v273_v50  ;;  %v275_v54 = vld [vmem:[#allocation8 + $0x10] sm:$0xff]  ;;  %v277_v57 = vld [vmem:[#allocation8 + $0x20] sm:$0xff] }
  0x57   :  { %646 = vmatpush3.bf16.msra.mxu0 %v645_v19  ;;  %671 = vmatprep.subr.bf16.mxu1 %v869_v0  ;;  %v276_v55 = vld [vmem:[#allocation8 + $0x18] sm:$0xff]  ;;  %v278_v58 = vld [vmem:[#allocation8 + $0x28] sm:$0xff]  ;;  %v279_v60 = vld [vmem:[#allocation8 + $0x30] sm:$0xff] }
  0x58   :  { %647 = vmatprep.subr.bf16.mxu0 %v869_v0  ;;  %v690_v56 = vpack.c.bf16 %v276_v55, %v275_v54  ;;  %v693_v59 = vpack.c.bf16 %v278_v58, %v277_v57  ;;  %v280_v61 = vld [vmem:[#allocation8 + $0x38] sm:$0xff]  ;;  %v281_v63 = vld [vmem:[#allocation8 + $0x40] sm:$0xff]  ;;  %v282_v2 = vld [vmem:[#allocation8 + $0x48] sm:$0xff] }
  0x59   :  { %v696_v62 = vpack.c.bf16 %v280_v61, %v279_v60  ;;  %v699_v3 = vpack.c.bf16 %v282_v2, %v281_v63  ;;  %v284_v4 = vld [vmem:[#allocation8 + $0x58] sm:$0xff]  ;;  %v285_v6 = vld [vmem:[#allocation8 + $0x60] sm:$0xff]  ;;  %v286_v7 = vld [vmem:[#allocation8 + $0x68] sm:$0xff] }
  0x5a   :  { %673 = vmatpush3.bf16.msra.mxu1 %v672_v24  ;;  %v705_v8 = vpack.c.bf16 %v286_v7, %v285_v6  ;;  %v287_v9 = vld [vmem:[#allocation8 + $0x70] sm:$0xff]  ;;  %v288_v10 = vld [vmem:[#allocation8 + $0x78] sm:$0xff] }
  0x5b   :  { %649 = vmatpush3.bf16.msra.mxu0 %v648_v25  ;;  %674 = vmatprep.subr.bf16.mxu1 %v869_v0  ;;  %v708_v11 = vpack.c.bf16 %v288_v10, %v287_v9  ;;  %v473_v12 = vld [vmem:[%s1046_s4] ss:$0 sm:$0xff]  ;;  %s872_s4 = smov [#allocation11]  }
  0x5c   :  { %650 = vmatprep.subr.bf16.mxu0 %v869_v0  ;;  %v472_v13 = vld [vmem:[%s1044_s2] ss:$0 sm:$0xff]  ;;  %s457_s12 = sshll.u32 %s872_s4, 4  ;;  %s458_s12 = int_to_ptr.vmem [resolvable:$true] %s457_s12 }
  0x5d   :  { %v474_v20 = vld [vmem:[%s1048_s6] ss:$0 sm:$0xff]  ;;  %s809_s2 = scalar_lea.vmem %s458_s12, 128  ;;  %p814_p5 = scmp.lt.s32.totalorder %s458_s12, %s458_s12 }
  0x5e   :  { %676 = vmatpush3.bf16.msra.mxu1 %v675_v30  ;;  %p810_p4 = scmp.ne.s32.totalorder %s458_s12, %s809_s2  ;;  %p815_p6 = scmp.lt.s32.totalorder %s809_s2, %s809_s2 }
  0x5f   :  { %652 = vmatpush3.bf16.msra.mxu0 %v651_v31  ;;  %677 = vmatprep.subr.bf16.mxu1 %v869_v0 }
  0x60   :  { %653 = vmatprep.subr.bf16.mxu0 %v869_v0  ;;  %p816_p7 = por %p815_p6, %p814_p5 }
  0x62   :  { %679 = vmatpush3.bf16.msra.mxu1 %v678_v36  ;;  %p817_p8 = pnand %p816_p7, %p810_p4 }
  0x63   :  { %655 = vmatpush3.bf16.msra.mxu0 %v654_v37  ;;  %680 = vmatprep.subr.bf16.mxu1 %v869_v0 }
  0x64   :  { %656 = vmatprep.subr.bf16.mxu0 %v869_v0 }
  0x66   :  { %682 = vmatpush3.bf16.msra.mxu1 %v681_v42 }
  0x67   :  { %658 = vmatpush3.bf16.msra.mxu0 %v657_v43  ;;  %683 = vmatprep.subr.bf16.mxu1 %v869_v0 }
  0x68   :  { %659 = vmatprep.subr.bf16.mxu0 %v869_v0 }
  0x6a   :  { %685 = vmatpush3.bf16.msra.mxu1 %v684_v48 }
  0x6b   :  { %661 = vmatpush3.bf16.msra.mxu0 %v660_v49  ;;  %633 = vmatprep.subr.mxu1 %v871_v1 }
  0x6c   :  { %686 = vmatprep.subr.bf16.mxu0 %v869_v0 }
  0x6d   :  { %596 = vmatmul.mubr.f32.vlgmr.msra.gmra.mrb[0].mxu1 %v84_v52 }
  0x6e   :  { %561 = vmatmul.mubr.f32.vlgmr.msra.gmra.mrb[0].mxu0 %v84_v52  ;;  %635 = vmatprep.mubr.msk.f32.mxu1 %vm870_vm0, %v871_v1 }
  0x6f   :  { %688 = vmatpush3.bf16.msra.mxu0 %v687_v53  ;;  %630 = vmatprep.mubr.msk.f32.mxu0 %vm870_vm0, %v871_v1  ;;  %v283_v1 = vld [vmem:[#allocation8 + $0x50] sm:$0xff] }
  0x70   :  { %689 = vmatprep.subr.bf16.mxu0 %v869_v0  ;;  %v702_v5 = vpack.c.bf16 %v284_v4, %v283_v1 }
  0x73   :  { %691 = vmatpush3.bf16.msra.mxu0 %v690_v56 }
  0x74   :  { %692 = vmatprep.subr.bf16.mxu0 %v869_v0 }
  0x77   :  { %694 = vmatpush3.bf16.msra.mxu0 %v693_v59 }
  0x78   :  { %695 = vmatprep.subr.bf16.mxu0 %v869_v0 }
  0x7b   :  { %697 = vmatpush3.bf16.msra.mxu0 %v696_v62 }
  0x7c   :  { %698 = vmatprep.subr.bf16.mxu0 %v869_v0 }
  0x7f   :  { %700 = vmatpush3.bf16.msra.mxu0 %v699_v3 }
  0x80   :  { %701 = vmatprep.subr.bf16.mxu0 %v869_v0 }
  0x83   :  { %703 = vmatpush3.bf16.msra.mxu0 %v702_v5 }
  0x84   :  { %704 = vmatprep.subr.bf16.mxu0 %v869_v0 }
  0x87   :  { %706 = vmatpush3.bf16.msra.mxu0 %v705_v8 }
  0x88   :  { %707 = vmatprep.subr.bf16.mxu0 %v869_v0 }
  0x8b   :  { %709 = vmatpush3.bf16.msra.mxu0 %v708_v11 }
  0x8e   :  { %631 = vmatmul.mubr.f32.vlgmr.msra.gmra.mrb[2].mxu0 %v84_v52 }
 0x140   :  { %v269_v14 = vpop.f32.mrb[0].mxu1 }
 0x141   :  { %v270_v15 = vadd.f32 %v473_v12, %v269_v14  ;;  %v176_v16 = vpop.f32.mrb[0].mxu0  ;;  %v597_v17 = vpop.f32.mrb[1].mxu1 }
 0x142   :  { %v177_v18 = vadd.f32 %v472_v13, %v176_v16  ;;  %v562_v19 = vpop.f32.mrb[1].mxu0 }
 0x143   :  { %634 = vmatpush3.xpose.msra.mxu1 %v270_v15 }
 0x144   :  { %v367_v0 = vmul.f32 0.17677669, %v177_v18 }
 0x146   :  { %636 = vmatmul.mubr.f32.vlgmr.msra.gmra.mrb[2].mxu1 %v367_v0 }
 0x161   :  { %v362_v21 = vpop.f32.mrb[2].mxu0 }
 0x162   :  { %v363_v22 = vadd.f32 %v474_v20, %v362_v21  ;;  %v632_v23 = vpop.f32.mrb[3].mxu0 }
 0x164   :  { %440 = vst [vmem:[#allocation11] sm:$0xff] %v363_v22 }
 0x165   :  { %820 = shalt.err (!%p817_p8)
}
 0x166   :  { %s821_s17 = scalar_lea.hbm %s1050_s8, 128 }
 0x167   :  { %p822_p9 = scmp.ne.s32.totalorder %s1050_s8, %s821_s17  ;;  %p825_p10 = scmp.lt.u32.totalorder %s821_s17, %s1050_s8 }
 0x169   :  { %p827_p11 = pnand %p825_p10, %p822_p9 }
 0x16b   :  { %830 = shalt.err (!%p827_p11)
}
 0x16c   :  { %460 = dma.vmem_to_hbm [thread:$0]  %s458_s12, 128, %s1050_s8, [#allocation12]   ;;  %vm438_vm1 = vcmask 64512  }
 0x16d   :  { %s873_s23 = smov [#allocation10]  }
 0x16e   :  { %s447_s24 = sshll.u32 %s873_s23, 4  ;;  %s448_s24 = int_to_ptr.vmem [resolvable:$true] %s447_s24 }
 0x16f   :  { %s831_s25 = scalar_lea.vmem %s448_s24, 128  ;;  %p836_p13 = scmp.lt.s32.totalorder %s448_s24, %s448_s24 }
 0x170   :  { %p832_p12 = scmp.ne.s32.totalorder %s448_s24, %s831_s25  ;;  %p837_p0 = scmp.lt.s32.totalorder %s831_s25, %s831_s25 }
 0x172   :  { %p838_p1 = por %p837_p0, %p836_p13 }
 0x174   :  { %p839_p2 = pnand %p838_p1, %p832_p12 }
 0x219   :  { %v434_v24 = vpop.f32.mrb[2].mxu1 }
 0x21a   :  { %v637_v25 = vpop.f32.mrb[3].mxu1  ;;  %439 = vst.msk [vmem:[#allocation10] sm:$0xff] %vm438_vm1, %v434_v24 }
 0x21b   :  { %842 = shalt.err (!%p839_p2)
}
 0x21c   :  { %s843_s29 = scalar_lea.hbm %s1049_s7, 128 }
 0x21d   :  { %p844_p3 = scmp.ne.s32.totalorder %s1049_s7, %s843_s29  ;;  %p847_p4 = scmp.lt.u32.totalorder %s843_s29, %s1049_s7 }
 0x21f   :  { %p849_p5 = pnand %p847_p4, %p844_p3 }
 0x221   :  { %852 = shalt.err (!%p849_p5)
}
 0x222   :  { %450 = dma.vmem_to_hbm [thread:$0]  %s448_s24, 128, %s1049_s7, [#allocation4]  }
 0x223   :  { %859 = dma.done.wait [#allocation4], 128  }
 0x224   :  { %860 = vsyncadd [#allocation4], 4294967168 }
 0x225   :  { %861 = dma.done.wait [#allocation12], 128  }
 0x226   :  { %862 = vsyncadd [#allocation12], 4294967168 }
 0x227   :  { %467 = vsyncpa [#allocation3], 1 }
 0x228   :  { %468 = vsyncpa [#allocation6], 1 }
 0x229   :  { %469 = vsyncpa [#allocation9], 1 }
 0x22a   :  { %470 = vsyncpa [#allocation4], 1 }
 0x22b   :  { %471 = vsyncpa [#allocation12], 1 }

</bundles_post_ra>
